<compile_context>
chip_gen: v7x
topology: tpu7x:2x2x1
jax: 0.10.0
libtpu: 0.0.40
codegen_flags: <defaults>
</compile_context>

<pallas_src>
import jax
import jax.numpy as jnp
from jax import lax
from jax.experimental import pallas as pl
from jax.experimental.pallas import tpu as pltpu

_LANES = 512  # lane-dense width (multiple of 128)


def _cdiv(a, b):
    return -(-a // b)


def _round_up(a, b):
    return _cdiv(a, b) * b


def _chip_config():
    """Per-generation block sizing. Conservative defaults if detection fails."""
    kind = ""
    try:
        kind = jax.devices()[0].device_kind.lower()
    except Exception:
        pass
    if "v7" in kind or "7x" in kind:
        # 2 TensorCores/chip: split rows into two parts; 2 inputs x 2 buffers
        # x 4 MiB fits the default scoped VMEM.
        # TODO(synk): verify the leading "parallel" axis really core-shards on
        # v7x; if not, switch it to pltpu.CORE_PARALLEL / pl.core_map.
        return dict(max_block_rows=2048, num_parts=2, vmem_limit=None)
    if "v6" in kind:
        return dict(max_block_rows=2048, num_parts=1, vmem_limit=48 * 1024 * 1024)
    # v5e / v4 / unknown: stay within the small default scoped-VMEM limit.
    return dict(max_block_rows=1024, num_parts=1, vmem_limit=None)


def _make_esr_kernel(block_rows, band_rows, lanes, valid_rows, steps):
    """valid_rows is the static count of real rows; rows beyond it are masked."""
    bands = block_rows // band_rows

    def kernel(pred_ref, tgt_ref, part_ref):
        p = pl.program_id(0)
        j = pl.program_id(1)

        # Zero this part's resident output accumulator at the start of its
        # reduction axis.
        @pl.when(j == 0)
        def _():
            part_ref[...] = jnp.zeros(part_ref.shape, part_ref.dtype)

        blk_start = (p * steps + j) * block_rows      # first global row of block
        valid_in_blk = valid_rows - blk_start         # may be <= 0 or > block_rows
        row_iota = lax.broadcasted_iota(jnp.int32, (band_rows, 1), 0)

        # Register-carried per-lane partial sums; VPU-only work, no cross-lane
        # reduce and no per-band VMEM read-modify-write.
        def band_body(g, carry):
            sse, nrg = carry
            r = pl.multiple_of(g * band_rows, band_rows)
            mask = row_iota < (valid_in_blk - r)      # rows past real data -> 0
            o = pred_ref[pl.ds(r, band_rows), :].astype(jnp.float32)
            t = tgt_ref[pl.ds(r, band_rows), :].astype(jnp.float32)
            o = jnp.where(mask, o, 0.0)
            t = jnp.where(mask, t, 0.0)
            d = t - o
            return sse + d * d, nrg + t * t

        zeros = jnp.zeros((band_rows, lanes), jnp.float32)
        sse_blk, nrg_blk = lax.fori_loop(0, bands, band_body, (zeros, zeros))

        # One RMW of the resident output block per grid step.
        part_ref[0, 0, :, :] += sse_blk
        part_ref[0, 1, :, :] += nrg_blk

    return kernel


def esr_loss(output, target):
    """Pallas ESR loss. `output` and `target` have identical shapes."""
    assert output.shape == target.shape
    n = int(output.size)
    assert n > 0

    itemsize = jnp.dtype(output.dtype).itemsize
    band_rows = max(8, 32 // max(1, itemsize))  # 8 rows f32, 16 bf16, 32 int8

    pred = output.reshape(-1)
    tgt = target.reshape(-1)

    rows = _cdiv(n, _LANES)
    padded_n = rows * _LANES
    if padded_n != n:
        # Rare path only (n not a multiple of 512): pad by < 512 zeros so the
        # lane-dense reshape is legal. Zeros contribute 0 to both sums and the
        # means divide by the true n, so semantics are unchanged.
        pred = jnp.pad(pred, (0, padded_n - n))
        tgt = jnp.pad(tgt, (0, padded_n - n))
    pred2d = pred.reshape(rows, _LANES)
    tgt2d = tgt.reshape(rows, _LANES)

    cfg = _chip_config()
    num_parts = cfg["num_parts"]

    # Adaptive block sizing: overshoot bounded to < one band per block instead
    # of a whole chunk.
    steps = max(1, _cdiv(rows, num_parts * cfg["max_block_rows"]))
    block_rows = max(band_rows, _round_up(_cdiv(rows, num_parts * steps), band_rows))

    in_map = lambda p, j: (p * steps + j, 0)

    cp_kwargs = dict(dimension_semantics=("parallel", "arbitrary"))
    if cfg["vmem_limit"] is not None:
        cp_kwargs["vmem_limit_bytes"] = cfg["vmem_limit"]

    cost = pl.CostEstimate(
        flops=5 * n,
        transcendentals=0,
        bytes_accessed=2 * n * itemsize + num_parts * 2 * band_rows * _LANES * 4,
    )

    partials = pl.pallas_call(
        _make_esr_kernel(block_rows, band_rows, _LANES, rows, steps),
        out_shape=jax.ShapeDtypeStruct((num_parts, 2, band_rows, _LANES), jnp.float32),
        grid_spec=pltpu.PrefetchScalarGridSpec(
            num_scalar_prefetch=0,
            grid=(num_parts, steps),
            in_specs=[
                pl.BlockSpec((block_rows, _LANES), in_map),
                pl.BlockSpec((block_rows, _LANES), in_map),
            ],
            out_specs=pl.BlockSpec(
                (1, 2, band_rows, _LANES), lambda p, j: (p, 0, 0, 0)
            ),
        ),
        compiler_params=pltpu.CompilerParams(**cp_kwargs),
        cost_estimate=cost,
    )(pred2d, tgt2d)

    # Tiny final combine (a few KiB) in plain JAX: sum per-part per-lane
    # partials, divide by the true element count, apply the energy normalizer.
    total = jnp.float32(n)
    sse = jnp.sum(partials[:, 0])
    energy_sum = jnp.sum(partials[:, 1])
    return (sse / total) / (energy_sum / total + 1e-05)


def esr_loss_ref(output, target):
    """Pure-JAX reference matching the PyTorch semantics."""
    loss = jnp.mean((target - output) ** 2)
    energy = jnp.mean(target ** 2) + 1e-05
    return loss / energy


if __name__ == "__main__":
    key = jax.random.PRNGKey(0)
    k1, k2, k3, k4 = jax.random.split(key, 4)

    # Primary: small RNN-style output (batch=2, seq=8, hidden=32), f32,
    # lane-aligned (zero-copy path).
    out_f32 = jax.random.normal(k1, (2, 8, 32), dtype=jnp.float32)
    tgt_f32 = jax.random.normal(k2, (2, 8, 32), dtype=jnp.float32)
    loss = jax.block_until_ready(esr_loss(out_f32, tgt_f32))
    ref = esr_loss_ref(out_f32, tgt_f32)
    assert jnp.allclose(loss, ref, rtol=1e-4, atol=1e-6), (loss, ref)

    # Secondary: non-lane-aligned size + bf16 streaming path (16-row bands,
    # in-kernel band masking of the ragged tail).
    out_bf = jax.random.normal(k3, (2, 300, 32), dtype=jnp.bfloat16)
    tgt_bf = jax.random.normal(k4, (2, 300, 32), dtype=jnp.bfloat16)
    loss_bf = jax.block_until_ready(esr_loss(out_bf, tgt_bf))
    ref_bf = esr_loss_ref(out_bf.astype(jnp.float32), tgt_bf.astype(jnp.float32))
    assert jnp.allclose(loss_bf, ref_bf, rtol=1e-3, atol=1e-5), (loss_bf, ref_bf)

    print("KERNEL_OK")
</pallas_src>

<mosaic_0001>
module attributes {stable_mosaic.version = 11 : i64} {
  func.func @kernel(%arg0: i32, %arg1: i32, %arg2: memref<8x512xf32, #tpu.memory_space<vmem>>, %arg3: memref<8x512xf32, #tpu.memory_space<vmem>>, %arg4: memref<1x2x8x512xf32, #tpu.memory_space<vmem>>) attributes {dimension_semantics = [#tpu.dimension_semantics<parallel>, #tpu.dimension_semantics<arbitrary>], iteration_bounds = array<i64: 1, 1>, scalar_prefetch = 0 : i64, scratch_operands = 0 : i64, tpu.core_type = #tpu.core_type<tc>, window_params = [{transform_indices = @transform_0, window_bounds = array<i64: 8, 512>}, {transform_indices = @transform_1, window_bounds = array<i64: 8, 512>}, {transform_indices = @transform_2, window_bounds = array<i64: 1, 2, 8, 512>}]} {
    %c0_i32 = arith.constant 0 : i32
    %0 = arith.cmpi eq, %arg1, %c0_i32 : i32
    %1 = arith.extui %0 : i1 to i32
    %c0_i32_0 = arith.constant 0 : i32
    %2 = arith.cmpi ne, %1, %c0_i32_0 : i32
    scf.if %2 {
      %cst_23 = arith.constant 0.000000e+00 : f32
      %43 = vector.broadcast %cst_23 : f32 to vector<1x2x8x512xf32>
      %c0_24 = arith.constant 0 : index
      %c0_25 = arith.constant 0 : index
      %c0_26 = arith.constant 0 : index
      %c0_27 = arith.constant 0 : index
      %44 = vector.load %arg4[%c0_24, %c0_25, %c0_26, %c0_27] : memref<1x2x8x512xf32, #tpu.memory_space<vmem>>, vector<1x2x8x512xf32>
      tpu.vector_store %arg4[%c0_24, %c0_25, %c0_26, %c0_27], %43 {strides = array<i32>} : memref<1x2x8x512xf32, #tpu.memory_space<vmem>>, vector<1x2x8x512xf32>,
    } else {
    }
    %c1_i32 = arith.constant 1 : i32
    %3 = arith.muli %arg0, %c1_i32 : i32
    %4 = arith.addi %3, %arg1 : i32
    %c8_i32 = arith.constant 8 : i32
    %5 = arith.muli %4, %c8_i32 : i32
    %c1_i32_1 = arith.constant 1 : i32
    %6 = arith.subi %c1_i32_1, %5 : i32
    %7 = tpu.iota {dimensions = array<i32: 0>} : vector<8x1xi32>
    %cst = arith.constant 0.000000e+00 : f32
    %8 = vector.broadcast %cst : f32 to vector<8x512xf32>
    %c0_i32_2 = arith.constant 0 : i32
    %c8_i32_3 = arith.constant 8 : i32
    %9 = arith.muli %c0_i32_2, %c8_i32_3 : i32
    %10 = tpu.assume_multiple %9, 8 : i32
    %11 = arith.subi %6, %10 : i32
    %12 = vector.broadcast %11 : i32 to vector<8x1xi32>
    %13 = arith.cmpi slt, %7, %12 : vector<8x1xi32>
    %14 = arith.index_cast %10 : i32 to index
    %c0 = arith.constant 0 : index
    %15 = vector.load %arg2[%14, %c0] : memref<8x512xf32, #tpu.memory_space<vmem>>, vector<8x512xf32>
    %16 = arith.index_cast %10 : i32 to index
    %c0_4 = arith.constant 0 : index
    %17 = vector.load %arg3[%16, %c0_4] : memref<8x512xf32, #tpu.memory_space<vmem>>, vector<8x512xf32>
    %cst_5 = arith.constant 0.000000e+00 : f32
    %18 = vector.shape_cast %13 : vector<8x1xi1> to vector<8x1xi1>
    %19 = vector.broadcast %18 : vector<8x1xi1> to vector<8x512xi1>
    %20 = vector.broadcast %cst_5 : f32 to vector<8x512xf32>
    %21 = arith.select %19, %15, %20 : vector<8x512xi1>, vector<8x512xf32>
    %cst_6 = arith.constant 0.000000e+00 : f32
    %22 = vector.shape_cast %13 : vector<8x1xi1> to vector<8x1xi1>
    %23 = vector.broadcast %22 : vector<8x1xi1> to vector<8x512xi1>
    %24 = vector.broadcast %cst_6 : f32 to vector<8x512xf32>
    %25 = arith.select %23, %17, %24 : vector<8x512xi1>, vector<8x512xf32>
    %26 = arith.subf %25, %21 : vector<8x512xf32>
    %27 = arith.mulf %26, %26 : vector<8x512xf32>
    %28 = arith.addf %8, %27 : vector<8x512xf32>
    %29 = arith.mulf %25, %25 : vector<8x512xf32>
    %30 = arith.addf %8, %29 : vector<8x512xf32>
    %c1_i32_7 = arith.constant 1 : i32
    %c0_8 = arith.constant 0 : index
    %c0_9 = arith.constant 0 : index
    %c0_10 = arith.constant 0 : index
    %c0_11 = arith.constant 0 : index
    %31 = vector.load %arg4[%c0_8, %c0_9, %c0_10, %c0_11] : memref<1x2x8x512xf32, #tpu.memory_space<vmem>>, vector<1x1x8x512xf32>
    %32 = vector.shape_cast %31 : vector<1x1x8x512xf32> to vector<8x512xf32>
    %33 = arith.addf %32, %28 : vector<8x512xf32>
    %c0_12 = arith.constant 0 : index
    %c0_13 = arith.constant 0 : index
    %c0_14 = arith.constant 0 : index
    %c0_15 = arith.constant 0 : index
    %34 = vector.load %arg4[%c0_12, %c0_13, %c0_14, %c0_15] : memref<1x2x8x512xf32, #tpu.memory_space<vmem>>, vector<1x1x8x512xf32>
    %35 = vector.shape_cast %34 : vector<1x1x8x512xf32> to vector<8x512xf32>
    %36 = vector.shape_cast %33 : vector<8x512xf32> to vector<1x1x8x512xf32>
    tpu.vector_store %arg4[%c0_12, %c0_13, %c0_14, %c0_15], %36 {strides = array<i32>} : memref<1x2x8x512xf32, #tpu.memory_space<vmem>>, vector<1x1x8x512xf32>,
    %c0_16 = arith.constant 0 : index
    %c1 = arith.constant 1 : index
    %c0_17 = arith.constant 0 : index
    %c0_18 = arith.constant 0 : index
    %37 = vector.load %arg4[%c0_16, %c1, %c0_17, %c0_18] : memref<1x2x8x512xf32, #tpu.memory_space<vmem>>, vector<1x1x8x512xf32>
    %38 = vector.shape_cast %37 : vector<1x1x8x512xf32> to vector<8x512xf32>
    %39 = arith.addf %38, %30 : vector<8x512xf32>
    %c0_19 = arith.constant 0 : index
    %c1_20 = arith.constant 1 : index
    %c0_21 = arith.constant 0 : index
    %c0_22 = arith.constant 0 : index
    %40 = vector.load %arg4[%c0_19, %c1_20, %c0_21, %c0_22] : memref<1x2x8x512xf32, #tpu.memory_space<vmem>>, vector<1x1x8x512xf32>
    %41 = vector.shape_cast %40 : vector<1x1x8x512xf32> to vector<8x512xf32>
    %42 = vector.shape_cast %39 : vector<8x512xf32> to vector<1x1x8x512xf32>
    tpu.vector_store %arg4[%c0_19, %c1_20, %c0_21, %c0_22], %42 {strides = array<i32>} : memref<1x2x8x512xf32, #tpu.memory_space<vmem>>, vector<1x1x8x512xf32>,
    return
  }
  func.func @transform_0(%arg0: i32, %arg1: i32) -> (i32, i32) {
    %c1_i32 = arith.constant 1 : i32
    %0 = arith.muli %arg0, %c1_i32 : i32
    %1 = arith.addi %0, %arg1 : i32
    %c0_i32 = arith.constant 0 : i32
    %c0_i32_0 = arith.constant 0 : i32
    return %1, %c0_i32 : i32, i32
  }
  func.func @transform_1(%arg0: i32, %arg1: i32) -> (i32, i32) {
    %c1_i32 = arith.constant 1 : i32
    %0 = arith.muli %arg0, %c1_i32 : i32
    %1 = arith.addi %0, %arg1 : i32
    %c0_i32 = arith.constant 0 : i32
    %c0_i32_0 = arith.constant 0 : i32
    return %1, %c0_i32 : i32, i32
  }
  func.func @transform_2(%arg0: i32, %arg1: i32) -> (i32, i32, i32, i32) {
    %c0_i32 = arith.constant 0 : i32
    %c0_i32_0 = arith.constant 0 : i32
    %c0_i32_1 = arith.constant 0 : i32
    %c0_i32_2 = arith.constant 0 : i32
    return %arg0, %c0_i32, %c0_i32_0, %c0_i32_1 : i32, i32, i32, i32
  }
}

</mosaic_0001>

<bundles_post_ra>
// kernel: tpu_custom_call.1
= control target key start
LH: loop header
LB: loop body
LE: loop exit
PB: predicated region body
PF: predicated region fallthrough
CT: control target
= control target key end

     0   :  { %7 = vsyncpa [#allocation3], 0  ;;  %s506_s0 = inlined_call_operand.hbm [shape: f32[1,512], index: 0, kind: input, shape index: {}]   ;;  %s507_s1 = inlined_call_operand.hbm [shape: f32[1,512], index: 1, kind: input, shape index: {}]   ;;  %s508_s2 = inlined_call_operand.hbm [shape: f32[1,2,8,512], index: 2, kind: output, shape index: {}]  }
   0x1   :  { %8 = vsyncpa [#allocation6], 0 }
   0x2   :  { %9 = vsyncpa [#allocation4], 0 }
   0x3   :  { %19 = vsyncadd [#allocation3], 448  ;;  %s439_s9 = smov [#allocation2]   ;;  %s367_s13 = scalar_lea.hbm %s506_s0, 64 }
   0x4   :  { %s25_s10 = sshll.u32 %s439_s9, 4  ;;  %p368_p0 = scmp.ne.s32.totalorder %s506_s0, %s367_s13  ;;  %s26_s10 = int_to_ptr.vmem [resolvable:$true] %s25_s10 }
   0x5   :  { %p371_p1 = scmp.lt.u32.totalorder %s367_s13, %s506_s0 }
   0x7   :  { %p373_p2 = pnand %p371_p1, %p368_p0 }
   0x9   :  { %376 = shalt.err (!%p373_p2)
}
   0xa   :  { %s377_s18 = scalar_lea.vmem %s26_s10, 64  ;;  %s381_s19 = scalar_lea.vmem %s26_s10, 512 }
   0xb   :  { %p378_p3 = scmp.ne.s32.totalorder %s26_s10, %s377_s18  ;;  %p382_p4 = scmp.lt.s32.totalorder %s26_s10, %s26_s10 }
   0xc   :  { %p383_p5 = scmp.lt.s32.totalorder %s381_s19, %s377_s18 }
   0xe   :  { %p384_p6 = por %p383_p5, %p382_p4 }
  0x10   :  { %p385_p7 = pnand %p384_p6, %p378_p3 }
  0x12   :  { %388 = shalt.err (!%p385_p7)
}
  0x13   :  { %s440_s20 = smov 64   ;;  %s441_s21 = smov 4  }
  0x14   :  { %31 = dma.hbm_to_vmem [thread:$0]  %s506_s0, 64, %s26_s10, [#allocation3], %s440_s20, %s440_s20, %s441_s21  }
  0x15   :  { %41 = vsyncadd [#allocation6], 448  ;;  %s442_s24 = smov [#allocation5]   ;;  %s389_s28 = scalar_lea.hbm %s507_s1, 64 }
  0x16   :  { %s47_s25 = sshll.u32 %s442_s24, 4  ;;  %p390_p8 = scmp.ne.s32.totalorder %s507_s1, %s389_s28  ;;  %s48_s25 = int_to_ptr.vmem [resolvable:$true] %s47_s25 }
  0x17   :  { %p393_p9 = scmp.lt.u32.totalorder %s389_s28, %s507_s1 }
  0x19   :  { %p395_p10 = pnand %p393_p9, %p390_p8 }
  0x1b   :  { %398 = shalt.err (!%p395_p10)
}
  0x1c   :  { %s399_s5 = scalar_lea.vmem %s48_s25, 64  ;;  %s403_s0 = scalar_lea.vmem %s48_s25, 512 }
  0x1d   :  { %p400_p11 = scmp.ne.s32.totalorder %s48_s25, %s399_s5  ;;  %p404_p12 = scmp.lt.s32.totalorder %s48_s25, %s48_s25 }
  0x1e   :  { %p405_p13 = scmp.lt.s32.totalorder %s403_s0, %s399_s5 }
  0x20   :  { %p406_p0 = por %p405_p13, %p404_p12 }
  0x22   :  { %p407_p1 = pnand %p406_p0, %p400_p11 }
  0x24   :  { %410 = shalt.err (!%p407_p1)
}
  0x25   :  { %53 = dma.hbm_to_vmem [thread:$0]  %s507_s1, 64, %s48_s25, [#allocation6], %s440_s20, %s440_s20, %s441_s21  }
  0x26   :  { %433 = dma.done.wait [#allocation3], 512  }
  0x27   :  { %434 = vsyncadd [#allocation3], 4294966784 }
  0x28   :  { %435 = dma.done.wait [#allocation6], 512  }
  0x29   :  { %436 = vsyncadd [#allocation6], 4294966784  ;;  %v85_v0 = vlaneseq  ;;  %v443_v1 = vmov 1966171168   ;;  %s444_s1 = smov [#allocation7]  }
  0x2a   :  { %v124_v2 = vunpack.c.l.s4 %v443_v1  ;;  %v359_v6 = vld.sshfl [vmem:[#allocation2] sm:$0xff pattern:$0x75316420]  ;;  %v360_v7 = vld.sshfl [vmem:[#allocation2 + $0x8] sm:$0xff pattern:$0x75316420] }
  0x2b   :  { %v86_v3 = vshrl.u32 %v85_v0, 7  ;;  %v361_v8 = vld.sshfl [vmem:[#allocation2 + $0x10] sm:$0xff pattern:$0x75316420]  ;;  %v151_v14 = vcombine.low %v359_v6, %v360_v7  ;;  %v152_v16 = vcombine.high %v359_v6, %v360_v7  ;;  %s329_s8 = sshll.u32 %s444_s1, 4  ;;  %s330_s8 = int_to_ptr.vmem [resolvable:$true] %s329_s8 }
  0x2c   :  { %v125_v4 = vunpack.c.0.s8 %v124_v2  ;;  %v362_v9 = vld.sshfl [vmem:[#allocation2 + $0x18] sm:$0xff pattern:$0x75316420]  ;;  %v363_v10 = vld.sshfl [vmem:[#allocation5] sm:$0xff pattern:$0x75316420]  ;;  %p416_p3 = scmp.lt.s32.totalorder %s330_s8, %s330_s8 }
  0x2d   :  { %v364_v11 = vld.sshfl [vmem:[#allocation5 + $0x8] sm:$0xff pattern:$0x75316420]  ;;  %v365_v12 = vld.sshfl [vmem:[#allocation5 + $0x10] sm:$0xff pattern:$0x75316420]  ;;  %v153_v15 = vcombine.low %v361_v8, %v362_v9  ;;  %v154_v17 = vcombine.high %v361_v8, %v362_v9 }
  0x2e   :  { %v128_v5 = vsub.s32 %v125_v4, %v86_v3  ;;  %v366_v13 = vld.sshfl [vmem:[#allocation5 + $0x18] sm:$0xff pattern:$0x75316420]  ;;  %v235_v19 = vcombine.low %v363_v10, %v364_v11  ;;  %v236_v21 = vcombine.high %v363_v10, %v364_v11  ;;  %vm89_vm0 = vcmp.lt.s32.totalorder %v86_v3, 1  ;;  %s411_s9 = scalar_lea.vmem %s330_s8, 1024 }
  0x2f   :  { %v237_v20 = vcombine.low %v365_v12, %v366_v13  ;;  %v238_v25 = vcombine.high %v365_v12, %v366_v13  ;;  %p412_p2 = scmp.ne.s32.totalorder %s330_s8, %s411_s9  ;;  %p417_p4 = scmp.lt.s32.totalorder %s411_s9, %s411_s9 }
  0x30   :  { %v161_v18 = vrot.slane %v151_v14, %v128_v5  ;;  %v175_v22 = vrot.slane %v153_v15, %v128_v5  ;;  %v168_v23 = vrot.slane %v152_v16, %v128_v5  ;;  %v182_v24 = vrot.slane %v154_v17, %v128_v5 }
  0x31   :  { %v245_v26 = vrot.slane %v235_v19, %v128_v5  ;;  %v259_v27 = vrot.slane %v237_v20, %v128_v5  ;;  %v252_v28 = vrot.slane %v236_v21, %v128_v5  ;;  %v266_v31 = vrot.slane %v238_v25, %v128_v5  ;;  %p418_p5 = por %p417_p4, %p416_p3 }
  0x32   :  { %v183_v29 = vcombine.low %v161_v18, %v175_v22  ;;  %v185_v30 = vcombine.low %v168_v23, %v182_v24  ;;  %v184_v32 = vcombine.high %v161_v18, %v175_v22  ;;  %v186_v35 = vcombine.high %v168_v23, %v182_v24 }
  0x33   :  { %v267_v33 = vcombine.low %v245_v26, %v259_v27  ;;  %v268_v34 = vcombine.high %v245_v26, %v259_v27  ;;  %v269_v38 = vcombine.low %v252_v28, %v266_v31  ;;  %v270_v43 = vcombine.high %v252_v28, %v266_v31  ;;  %p419_p6 = pnand %p418_p5, %p412_p2 }
  0x34   :  { %v191_v36 = vsel %vm89_vm0, %v183_v29, 0.0  ;;  %v192_v37 = vsel %vm89_vm0, %v185_v30, 0.0  ;;  %v193_v39 = vsel %vm89_vm0, %v184_v32, 0.0  ;;  %v194_v42 = vsel %vm89_vm0, %v186_v35, 0.0 }
  0x35   :  { %v275_v40 = vsel %vm89_vm0, %v267_v33, 0.0  ;;  %v277_v41 = vsel %vm89_vm0, %v268_v34, 0.0  ;;  %v276_v45 = vsel %vm89_vm0, %v269_v38, 0.0  ;;  %v278_v49 = vsel %vm89_vm0, %v270_v43, 0.0 }
  0x36   :  { %v279_v44 = vsub.f32 %v275_v40, %v191_v36  ;;  %v281_v46 = vsub.f32 %v277_v41, %v193_v39  ;;  %v291_v47 = vmul.f32 %v275_v40, %v275_v40  ;;  %v280_v48 = vsub.f32 %v276_v45, %v192_v37 }
  0x37   :  { %v292_v50 = vmul.f32 %v276_v45, %v276_v45  ;;  %v293_v51 = vmul.f32 %v277_v41, %v277_v41  ;;  %v282_v54 = vsub.f32 %v278_v49, %v194_v42  ;;  %v294_v56 = vmul.f32 %v278_v49, %v278_v49 }
  0x38   :  { %v283_v52 = vmul.f32 %v279_v44, %v279_v44  ;;  %v285_v53 = vmul.f32 %v281_v46, %v281_v46  ;;  %v284_v55 = vmul.f32 %v280_v48, %v280_v48  ;;  %320 = vst [vmem:[#allocation7 + $0x20] sm:$0xff] %v291_v47 }
  0x39   :  { %v286_v57 = vmul.f32 %v282_v54, %v282_v54  ;;  %321 = vst [vmem:[#allocation7 + $0x28] sm:$0xff] %v292_v50  ;;  %322 = vst [vmem:[#allocation7 + $0x30] sm:$0xff] %v293_v51 }
  0x3a   :  { %307 = vst [vmem:[#allocation7] sm:$0xff] %v283_v52  ;;  %309 = vst [vmem:[#allocation7 + $0x10] sm:$0xff] %v285_v53 }
  0x3b   :  { %308 = vst [vmem:[#allocation7 + $0x8] sm:$0xff] %v284_v55  ;;  %323 = vst [vmem:[#allocation7 + $0x38] sm:$0xff] %v294_v56 }
  0x3c   :  { %310 = vst [vmem:[#allocation7 + $0x18] sm:$0xff] %v286_v57 }
  0x3d   :  { %422 = shalt.err (!%p419_p6)
}
  0x3e   :  { %s423_s12 = scalar_lea.hbm %s508_s2, 1024 }
  0x3f   :  { %p424_p7 = scmp.ne.s32.totalorder %s508_s2, %s423_s12  ;;  %p427_p8 = scmp.lt.u32.totalorder %s423_s12, %s508_s2 }
  0x41   :  { %p429_p9 = pnand %p427_p8, %p424_p7 }
  0x43   :  { %432 = shalt.err (!%p429_p9)
}
  0x44   :  { %s445_s17 = smov 512   ;;  %s446_s18 = smov 32  }
  0x45   :  { %335 = dma.vmem_to_hbm [thread:$0]  %s330_s8, 1024, %s508_s2, [#allocation4], %s445_s17, %s445_s17, %s446_s18  }
  0x46   :  { %437 = dma.done.wait [#allocation4], 1024  }
  0x47   :  { %438 = vsyncadd [#allocation4], 4294966272 }
  0x48   :  { %339 = vsyncpa [#allocation3], 1 }
  0x49   :  { %340 = vsyncpa [#allocation6], 1 }
  0x4a   :  { %341 = vsyncpa [#allocation4], 1 }

</bundles_post_ra>
